<compile_context>
chip_gen: v7x
topology: tpu7x:2x2x1
jax: 0.10.0
libtpu: 0.0.40
codegen_flags: <defaults>
</compile_context>

<pallas_src>
import jax
import jax.numpy as jnp
from jax import lax
from jax.experimental import pallas as pl
from jax.experimental.pallas import tpu as pltpu


def _round_up(a: int, b: int) -> int:
    return ((a + b - 1) // b) * b


def _threshold2d_kernel(ktile_ref, x_ref, o_ref):
    """out = x - tiled_threshold.

    ktile_ref : VMEM (SUB, col_tile)      -- threshold slab replicated to a full
                                             sublane tile (SUB = 8 for f32).
    x_ref     : VMEM (row_tile, col_tile) -- rows of the flattened (N*C, H*W) input.
    o_ref     : VMEM (row_tile, col_tile)
    """
    if x_ref.shape[0] == ktile_ref.shape[0]:
        # Whole-vreg operands, no broadcast at all (column-blocked / small-R regime).
        o_ref[...] = x_ref[...] - ktile_ref[...]
    else:
        # row_tile is a multiple of the slab height; a (1, C) sublane broadcast is
        # hidden under the HBM DMA (kernel is HBM-bound, VPU has slack).
        o_ref[...] = x_ref[...] - ktile_ref[0:1, :]


def threshold2d(x, kernel2x2, *, donate_input=False):
    N, C, H, W = x.shape
    assert H % 2 == 0 and W % 2 == 0, "MaxPool2d(2,2) requires even spatial dims"

    dtype = x.dtype
    itemsize = jnp.dtype(dtype).itemsize
    sub = max(8, 32 // itemsize)          # native sublane tile: 8 f32 / 16 bf16 / 32 int8

    R = N * C
    HW = H * W
    HW_pad = _round_up(HW, 128)           # lane-dense output -> unmasked stores

    # ---- constant-folded spatial threshold: spatial[h, w] = K[h % 2, w % 2] ----
    ktile = jnp.tile(kernel2x2.astype(dtype), (H // 2, W // 2)).reshape(1, HW)
    if HW_pad != HW:
        ktile = jnp.pad(ktile, ((0, 0), (0, HW_pad - HW)))
    ktile_slab = jnp.tile(ktile, (sub, 1))                      # (sub, HW_pad)

    x_flat = x.reshape(R, HW)
    if HW_pad != HW:
        # TODO(synk): pad costs an extra HBM pass; only taken for non-128-multiple H*W.
        x_flat = jnp.pad(x_flat, ((0, 0), (0, HW_pad - HW)))

    # ---- generation-aware tiling / VMEM budgeting ----
    vmem_bytes = 64 << 20                  # conservative fallback = v7x physical VMEM
    try:
        info = pltpu.get_tpu_info()
        vmem_bytes = int(getattr(info, "vmem_capacity_bytes", vmem_bytes))
    except Exception:
        pass

    # Per-tile byte target: ~8 MiB on 128 MiB parts (v5e/v6e), ~8 MiB on v7x (64 MiB),
    # scaled down automatically if VMEM is smaller.
    tile_budget = max(512 << 10, min(8 << 20, vmem_bytes // 8))
    bytes_per_row = HW_pad * itemsize

    if sub * bytes_per_row > tile_budget:
        # Very wide rows (large spatial maps): block the lane dimension too.
        row_tile = sub
        col_tile = max(128, ((tile_budget // (sub * itemsize)) // 128) * 128)
        col_tile = min(col_tile, HW_pad)
    else:
        col_tile = HW_pad
        row_tile = max(sub, ((tile_budget // bytes_per_row) // sub) * sub)
        row_tile = min(row_tile, _round_up(R, sub))

    nr = pl.cdiv(R, row_tile)
    nc = pl.cdiv(HW_pad, col_tile)

    # v7x megacore: guarantee >= 2 grid steps so both TensorCores (and both HBM
    # pipes) are used; sub-microsecond overhead on single-TC chips.
    if nr * nc < 2 and R > sub:
        row_tile = _round_up(-(-R // 2), sub)
        nr = pl.cdiv(R, row_tile)

    n_steps = nr * nc
    in_depth = 3 if n_steps >= 3 else 2    # 3-deep input buffering hides DMA issue latency

    # Explicit VMEM limit derived from the actual live footprint
    # (in_depth input buffers + 2 output buffers + 2 slab buffers) + margin.
    tile_bytes = row_tile * col_tile * itemsize
    ktile_block_bytes = sub * col_tile * itemsize
    live_bytes = (in_depth + 2) * tile_bytes + 2 * ktile_block_bytes
    vmem_limit = max(live_bytes * 2, live_bytes + (4 << 20), 16 << 20)
    vmem_limit = int(min(vmem_limit, vmem_bytes - (4 << 20)))

    def _x_block_spec():
        if in_depth > 2:
            try:
                return pl.BlockSpec((row_tile, col_tile), lambda r, c: (r, c),
                                    pipeline_mode=pl.Buffered(in_depth))
            except Exception:   # older jax without pipeline_mode / Buffered
                pass
        return pl.BlockSpec((row_tile, col_tile), lambda r, c: (r, c))

    extra_kwargs = {}
    if donate_input and HW_pad == HW:
        # x_flat is arg index 1 (after the threshold slab); reuse its HBM buffer for
        # the output to cut end-to-end HBM footprint (caller must not reuse x).
        extra_kwargs["input_output_aliases"] = {1: 0}

    out_flat = pl.pallas_call(
        _threshold2d_kernel,
        out_shape=jax.ShapeDtypeStruct((R, HW_pad), dtype),
        grid=(nr, nc),
        in_specs=[
            # Threshold slab: constant row-block index -> DMA'd once per column block,
            # stays resident in VMEM.
            pl.BlockSpec((sub, col_tile), lambda r, c: (0, c)),
            _x_block_spec(),
        ],
        out_specs=pl.BlockSpec((row_tile, col_tile), lambda r, c: (r, c)),
        compiler_params=pltpu.CompilerParams(
            dimension_semantics=("parallel", "parallel"),
            vmem_limit_bytes=vmem_limit,
        ),
        cost_estimate=pl.CostEstimate(
            flops=R * HW_pad,
            transcendentals=0,
            bytes_accessed=2 * R * HW_pad * itemsize + sub * HW_pad * itemsize,
        ),
        **extra_kwargs,
    )(ktile_slab, x_flat)

    if HW_pad != HW:
        out_flat = out_flat[:, :HW]
    return out_flat.reshape(N, C, H, W)


if __name__ == "__main__":
    N, C, H, W = 2, 4, 16, 16
    key = jax.random.PRNGKey(0)
    x = jax.random.normal(key, (N, C, H, W), dtype=jnp.float32)

    # Deterministic stand-in for the 2x2 threshold kernel the module loads from
    # './thresholds/threshold_2x2_v1.mat'.
    # TODO(synk): original values come from a .mat file; synthetic constants used here.
    kernel2x2 = jnp.array([[0.25, 0.5], [0.75, 1.0]], dtype=jnp.float32)

    out = jax.block_until_ready(threshold2d(x, kernel2x2))

    # Pure-JAX reference of the exact PyTorch forward.
    ones = jnp.sum(x, axis=1, keepdims=True) * 0.0 + 1.0
    pooled = lax.reduce_window(ones, -jnp.inf, lax.max,
                               (1, 1, 2, 2), (1, 1, 2, 2), "VALID")
    spatial = jnp.kron(pooled, kernel2x2[None, None, :, :])  # conv_transpose2d, stride=2
    ref = x - spatial

    assert out.shape == (N, C, H, W) and out.dtype == jnp.float32
    assert jnp.allclose(out, ref, atol=1e-5), "Pallas kernel does not match reference"
    print("KERNEL_OK")
</pallas_src>

<mosaic_0001>
module attributes {stable_mosaic.version = 11 : i64} {
  func.func @_threshold2d_kernel(%arg0: i32, %arg1: i32, %arg2: memref<8x256xf32, #tpu.memory_space<vmem>>, %arg3: memref<8x256xf32, #tpu.memory_space<vmem>>, %arg4: memref<8x256xf32, #tpu.memory_space<vmem>>) attributes {dimension_semantics = [#tpu.dimension_semantics<parallel>, #tpu.dimension_semantics<parallel>], iteration_bounds = array<i64: 1, 1>, scalar_prefetch = 0 : i64, scratch_operands = 0 : i64, tpu.core_type = #tpu.core_type<tc>, window_params = [{transform_indices = @transform_0, window_bounds = array<i64: 8, 256>}, {transform_indices = @transform_1, window_bounds = array<i64: 8, 256>}, {transform_indices = @transform_2, window_bounds = array<i64: 8, 256>}]} {
    %c0 = arith.constant 0 : index
    %c0_0 = arith.constant 0 : index
    %0 = vector.load %arg3[%c0, %c0_0] : memref<8x256xf32, #tpu.memory_space<vmem>>, vector<8x256xf32>
    %c0_1 = arith.constant 0 : index
    %c0_2 = arith.constant 0 : index
    %1 = vector.load %arg2[%c0_1, %c0_2] : memref<8x256xf32, #tpu.memory_space<vmem>>, vector<8x256xf32>
    %2 = arith.subf %0, %1 : vector<8x256xf32>
    %c0_3 = arith.constant 0 : index
    %c0_4 = arith.constant 0 : index
    %3 = vector.load %arg4[%c0_3, %c0_4] : memref<8x256xf32, #tpu.memory_space<vmem>>, vector<8x256xf32>
    tpu.vector_store %arg4[%c0_3, %c0_4], %2 {strides = array<i32>} : memref<8x256xf32, #tpu.memory_space<vmem>>, vector<8x256xf32>,
    return
  }
  func.func @transform_0(%arg0: i32, %arg1: i32) -> (i32, i32) {
    %c0_i32 = arith.constant 0 : i32
    %c0_i32_0 = arith.constant 0 : i32
    return %c0_i32, %arg1 : i32, i32
  }
  func.func @transform_1(%arg0: i32, %arg1: i32) -> (i32, i32) {
    %c0_i32 = arith.constant 0 : i32
    return %arg0, %arg1 : i32, i32
  }
  func.func @transform_2(%arg0: i32, %arg1: i32) -> (i32, i32) {
    %c0_i32 = arith.constant 0 : i32
    return %arg0, %arg1 : i32, i32
  }
}

</mosaic_0001>

<bundles_post_ra>
// kernel: tpu_custom_call.1
= control target key start
LH: loop header
LB: loop body
LE: loop exit
PB: predicated region body
PF: predicated region fallthrough
CT: control target
= control target key end

     0   :  { %7 = vsyncpa [#allocation3], 0  ;;  %s189_s0 = inlined_call_operand.hbm [shape: f32[8,256], index: 0, kind: input, shape index: {}]   ;;  %s190_s1 = inlined_call_operand.hbm [shape: f32[8,256], index: 1, kind: input, shape index: {}]   ;;  %s191_s2 = inlined_call_operand.hbm [shape: f32[8,256], index: 2, kind: output, shape index: {}]  }
   0x1   :  { %8 = vsyncpa [#allocation6], 0 }
   0x2   :  { %9 = vsyncpa [#allocation4], 0  ;;  %s135_s9 = smov [#allocation2]   ;;  %s136_s11 = smov [#allocation5]  }
   0x3   :  { %s16_s10 = sshll.u32 %s135_s9, 4  ;;  %s26_s12 = sshll.u32 %s136_s11, 4  ;;  %s17_s10 = int_to_ptr.vmem [resolvable:$true] %s16_s10  ;;  %s27_s12 = int_to_ptr.vmem [resolvable:$true] %s26_s12 }
   0x4   :  { %s63_s15 = scalar_lea.hbm %s189_s0, 256 }
   0x5   :  { %p64_p0 = scmp.ne.s32.totalorder %s189_s0, %s63_s15  ;;  %p67_p1 = scmp.lt.u32.totalorder %s63_s15, %s189_s0 }
   0x7   :  { %p69_p2 = pnand %p67_p1, %p64_p0 }
   0x9   :  { %72 = shalt.err (!%p69_p2)
}
   0xa   :  { %s73_s20 = scalar_lea.vmem %s17_s10, 256  ;;  %p78_p4 = scmp.lt.s32.totalorder %s17_s10, %s17_s10 }
   0xb   :  { %p74_p3 = scmp.ne.s32.totalorder %s17_s10, %s73_s20  ;;  %p79_p5 = scmp.lt.s32.totalorder %s73_s20, %s73_s20 }
   0xd   :  { %p80_p6 = por %p79_p5, %p78_p4 }
   0xf   :  { %p81_p7 = pnand %p80_p6, %p74_p3 }
  0x11   :  { %84 = shalt.err (!%p81_p7)
}
  0x12   :  { %19 = dma.hbm_to_vmem [thread:$0]  %s189_s0, 256, %s17_s10, [#allocation3]  }
  0x13   :  { %s85_s25 = scalar_lea.hbm %s190_s1, 256 }
  0x14   :  { %p86_p8 = scmp.ne.s32.totalorder %s190_s1, %s85_s25  ;;  %p89_p9 = scmp.lt.u32.totalorder %s85_s25, %s190_s1 }
  0x16   :  { %p91_p10 = pnand %p89_p9, %p86_p8 }
  0x18   :  { %94 = shalt.err (!%p91_p10)
}
  0x19   :  { %s95_s30 = scalar_lea.vmem %s27_s12, 256  ;;  %p100_p12 = scmp.lt.s32.totalorder %s27_s12, %s27_s12 }
  0x1a   :  { %p96_p11 = scmp.ne.s32.totalorder %s27_s12, %s95_s30  ;;  %p101_p13 = scmp.lt.s32.totalorder %s95_s30, %s95_s30 }
  0x1c   :  { %p102_p0 = por %p101_p13, %p100_p12 }
  0x1e   :  { %p103_p1 = pnand %p102_p0, %p96_p11 }
  0x20   :  { %106 = shalt.err (!%p103_p1)
}
  0x21   :  { %29 = dma.hbm_to_vmem [thread:$0]  %s190_s1, 256, %s27_s12, [#allocation6]  }
  0x22   :  { %129 = dma.done.wait [#allocation3], 256  }
  0x23   :  { %130 = vsyncadd [#allocation3], 4294967040 }
  0x24   :  { %131 = dma.done.wait [#allocation6], 256  }
  0x25   :  { %132 = vsyncadd [#allocation6], 4294967040  ;;  %s137_s4 = smov [#allocation7]   ;;  %v36_v0 = vld [vmem:[#allocation5] sm:$0xff]  ;;  %v38_v1 = vld [vmem:[#allocation2] sm:$0xff] }
  0x26   :  { %s50_s5 = sshll.u32 %s137_s4, 4  ;;  %v37_v2 = vld [vmem:[#allocation5 + $0x8] sm:$0xff]  ;;  %v40_v3 = vsub.f32 %v36_v0, %v38_v1  ;;  %v39_v4 = vld [vmem:[#allocation2 + $0x8] sm:$0xff]  ;;  %s51_s5 = int_to_ptr.vmem [resolvable:$true] %s50_s5 }
  0x27   :  { %v41_v5 = vsub.f32 %v37_v2, %v39_v4  ;;  %s107_s6 = scalar_lea.vmem %s51_s5, 256  ;;  %p112_p3 = scmp.lt.s32.totalorder %s51_s5, %s51_s5 }
  0x28   :  { %42 = vst [vmem:[#allocation7] sm:$0xff] %v40_v3  ;;  %p108_p2 = scmp.ne.s32.totalorder %s51_s5, %s107_s6  ;;  %p113_p4 = scmp.lt.s32.totalorder %s107_s6, %s107_s6 }
  0x29   :  { %43 = vst [vmem:[#allocation7 + $0x8] sm:$0xff] %v41_v5 }
  0x2a   :  { %p114_p5 = por %p113_p4, %p112_p3 }
  0x2c   :  { %p115_p6 = pnand %p114_p5, %p108_p2 }
  0x2e   :  { %118 = shalt.err (!%p115_p6)
}
  0x2f   :  { %s119_s8 = scalar_lea.hbm %s191_s2, 256 }
  0x30   :  { %p120_p7 = scmp.ne.s32.totalorder %s191_s2, %s119_s8  ;;  %p123_p8 = scmp.lt.u32.totalorder %s119_s8, %s191_s2 }
  0x32   :  { %p125_p9 = pnand %p123_p8, %p120_p7 }
  0x34   :  { %128 = shalt.err (!%p125_p9)
}
  0x35   :  { %53 = dma.vmem_to_hbm [thread:$0]  %s51_s5, 256, %s191_s2, [#allocation4]  }
  0x36   :  { %133 = dma.done.wait [#allocation4], 256  }
  0x37   :  { %134 = vsyncadd [#allocation4], 4294967040 }
  0x38   :  { %57 = vsyncpa [#allocation3], 1 }
  0x39   :  { %58 = vsyncpa [#allocation6], 1 }
  0x3a   :  { %59 = vsyncpa [#allocation4], 1 }

</bundles_post_ra>
